<compile_context>
chip_gen: v6e
topology: v6e:2x2x1
jax: 0.10.0
libtpu: 0.0.40
codegen_flags: <defaults>
</compile_context>

<pallas_src>
import functools

import jax
import jax.numpy as jnp
from jax.experimental import pallas as pl
from jax.experimental.pallas import tpu as pltpu


def _clip_reducer_kernel(x_ref, u_ref, ut_ref, bneck_ref, recon_ref):
    x = x_ref[...].astype(jnp.float32)

    # ---- reduce: bottleneck = l2norm(x @ U) ----
    b = jnp.dot(x, u_ref[...], preferred_element_type=jnp.float32)
    inv_b = jax.lax.rsqrt(jnp.sum(b * b, axis=-1, keepdims=True))  # EUP rsqrt
    bneck = b * inv_b
    bneck_ref[...] = bneck.astype(bneck_ref.dtype)

    # ---- reconstruct: recon = l2norm(bottleneck @ U.T) ----
    r = jnp.dot(bneck, ut_ref[...], preferred_element_type=jnp.float32)
    inv_r = jax.lax.rsqrt(jnp.sum(r * r, axis=-1, keepdims=True))
    recon_ref[...] = (r * inv_r).astype(recon_ref.dtype)


@functools.partial(jax.jit, static_argnames=("tm",))
def clip_reducer(embed, u, *, tm=256):
    """ClipReducer.forward: embed (..., E) -> (bottleneck (..., T), recon (..., E))."""
    E, T = u.shape
    lead = embed.shape[:-1]
    x = embed.reshape(-1, E)
    n = x.shape[0]

    # Shrink the row tile for tiny inputs (still 8-sublane aligned), then pad
    # the flattened row dim up to a multiple of the tile.  Padding uses ones so
    # padded rows stay finite through the eps-free L2 norm; they are sliced off
    # below, so semantics match PyTorch's x / x.norm().
    tm_eff = max(8, min(tm, pl.cdiv(n, 8) * 8))
    mp = pl.cdiv(n, tm_eff) * tm_eff
    if mp != n:
        x = jnp.pad(x, ((0, mp - n), (0, 0)), constant_values=1.0)
    ut = u.T  # (T, E): one-time XLA transpose so the kernel needs no XLU transpose

    cost = pl.CostEstimate(
        flops=4 * mp * E * T,                       # two matmuls: 2*mp*E*T each
        transcendentals=2 * mp,                     # one rsqrt per row, twice
        bytes_accessed=4 * (2 * mp * E + mp * T + 2 * E * T),
    )

    bneck, recon = pl.pallas_call(
        _clip_reducer_kernel,
        grid=(mp // tm_eff,),
        in_specs=[
            pl.BlockSpec((tm_eff, E), lambda i: (i, 0)),  # activation row tile per step
            pl.BlockSpec((E, T), lambda i: (0, 0)),       # U resident (constant block)
            pl.BlockSpec((T, E), lambda i: (0, 0)),       # U.T resident (constant block)
        ],
        out_specs=(
            pl.BlockSpec((tm_eff, T), lambda i: (i, 0)),
            pl.BlockSpec((tm_eff, E), lambda i: (i, 0)),
        ),
        out_shape=(
            jax.ShapeDtypeStruct((mp, T), embed.dtype),
            jax.ShapeDtypeStruct((mp, E), embed.dtype),
        ),
        compiler_params=pltpu.CompilerParams(
            dimension_semantics=("parallel",),        # shard row tiles across TCs (v7x megacore)
            vmem_limit_bytes=48 * 1024 * 1024,        # headroom for big row tiles; safe on v5e/v6e/v7x
        ),
        cost_estimate=cost,
    )(x, u, ut)

    bottleneck = bneck[:n].reshape(lead + (T,))
    recon = recon[:n].reshape(lead + (E,))
    return bottleneck, recon


def _reference(embed, u):
    """Pure-JAX reference of ClipReducer.forward."""
    b = jnp.matmul(embed, u, precision=jax.lax.Precision.HIGHEST)
    b = b / jnp.sqrt(jnp.sum(b * b, axis=-1, keepdims=True))
    r = jnp.matmul(b, u.T, precision=jax.lax.Precision.HIGHEST)
    r = r / jnp.sqrt(jnp.sum(r * r, axis=-1, keepdims=True))
    return b, r


if __name__ == "__main__":
    embed_size, target_size = 512, 128   # typical CLIP embed -> reduced size
    B, S = 2, 4                          # small batch x seq of CLIP embeddings

    key = jax.random.PRNGKey(0)
    ku, kx = jax.random.split(key)
    u = 0.1 * jax.random.normal(ku, (embed_size, target_size), jnp.float32)  # nn.init.normal_(std=0.1)
    embed = jax.random.normal(kx, (B, S, embed_size), jnp.float32)

    bottleneck, recon = clip_reducer(embed, u, tm=256)
    jax.block_until_ready((bottleneck, recon))

    assert bottleneck.shape == (B, S, target_size)
    assert recon.shape == (B, S, embed_size)

    # sanity check against pure-JAX reference
    ref_b, ref_r = _reference(embed, u)
    assert jnp.allclose(bottleneck, ref_b, rtol=1e-4, atol=1e-4)
    assert jnp.allclose(recon, ref_r, rtol=1e-4, atol=1e-4)

    # TODO(synk): ReduceLoss (arccos cosine loss) is not part of forward(); not implemented.
    print("KERNEL_OK")
</pallas_src>

<mosaic_0001>
module attributes {stable_mosaic.version = 11 : i64} {
  func.func @_clip_reducer_kernel(%arg0: i32, %arg1: memref<8x512xf32, #tpu.memory_space<vmem>>, %arg2: memref<512x128xf32, #tpu.memory_space<vmem>>, %arg3: memref<128x512xf32, #tpu.memory_space<vmem>>, %arg4: memref<8x128xf32, #tpu.memory_space<vmem>>, %arg5: memref<8x512xf32, #tpu.memory_space<vmem>>) attributes {dimension_semantics = [#tpu.dimension_semantics<parallel>], iteration_bounds = array<i64: 1>, scalar_prefetch = 0 : i64, scratch_operands = 0 : i64, tpu.core_type = #tpu.core_type<tc>, window_params = [{transform_indices = @transform_0, window_bounds = array<i64: 8, 512>}, {pipeline_mode = #tpu.pipeline_mode<synchronous>, transform_indices = @transform_1, window_bounds = array<i64: 512, 128>}, {pipeline_mode = #tpu.pipeline_mode<synchronous>, transform_indices = @transform_2, window_bounds = array<i64: 128, 512>}, {transform_indices = @transform_3, window_bounds = array<i64: 8, 128>}, {transform_indices = @transform_4, window_bounds = array<i64: 8, 512>}]} {
    %c0 = arith.constant 0 : index
    %c0_0 = arith.constant 0 : index
    %0 = vector.load %arg1[%c0, %c0_0] : memref<8x512xf32, #tpu.memory_space<vmem>>, vector<8x512xf32>
    %c0_1 = arith.constant 0 : index
    %c0_2 = arith.constant 0 : index
    %1 = vector.load %arg2[%c0_1, %c0_2] : memref<512x128xf32, #tpu.memory_space<vmem>>, vector<512x128xf32>
    %cst = arith.constant dense<0.000000e+00> : vector<8x128xf32>
    %2 = tpu.matmul %0, %1, %cst {dimension_numbers = #tpu.dot_dimension_numbers<[1], [0], [0], [1], [0, 0, 1, 1], [], []>} : vector<8x512xf32>, vector<512x128xf32>, vector<8x128xf32> -> vector<8x128xf32>
    %3 = arith.mulf %2, %2 : vector<8x128xf32>
    %cst_3 = arith.constant dense<0.000000e+00> : vector<8xf32>
    %4 = vector.multi_reduction <add>, %3, %cst_3 [1] : vector<8x128xf32> to vector<8xf32>
    %5 = vector.shape_cast %4 : vector<8xf32> to vector<8x1xf32>
    %6 = math.rsqrt %5 : vector<8x1xf32>
    %7 = vector.broadcast %6 : vector<8x1xf32> to vector<8x128xf32>
    %8 = arith.mulf %2, %7 : vector<8x128xf32>
    %c0_4 = arith.constant 0 : index
    %c0_5 = arith.constant 0 : index
    %9 = vector.load %arg4[%c0_4, %c0_5] : memref<8x128xf32, #tpu.memory_space<vmem>>, vector<8x128xf32>
    tpu.vector_store %arg4[%c0_4, %c0_5], %8 {strides = array<i32>} : memref<8x128xf32, #tpu.memory_space<vmem>>, vector<8x128xf32>,
    %c0_6 = arith.constant 0 : index
    %c0_7 = arith.constant 0 : index
    %10 = vector.load %arg3[%c0_6, %c0_7] : memref<128x512xf32, #tpu.memory_space<vmem>>, vector<128x512xf32>
    %cst_8 = arith.constant dense<0.000000e+00> : vector<8x512xf32>
    %11 = tpu.matmul %8, %10, %cst_8 {dimension_numbers = #tpu.dot_dimension_numbers<[1], [0], [0], [1], [0, 0, 1, 1], [], []>} : vector<8x128xf32>, vector<128x512xf32>, vector<8x512xf32> -> vector<8x512xf32>
    %12 = arith.mulf %11, %11 : vector<8x512xf32>
    %cst_9 = arith.constant dense<0.000000e+00> : vector<8xf32>
    %13 = vector.multi_reduction <add>, %12, %cst_9 [1] : vector<8x512xf32> to vector<8xf32>
    %14 = vector.shape_cast %13 : vector<8xf32> to vector<8x1xf32>
    %15 = math.rsqrt %14 : vector<8x1xf32>
    %16 = vector.broadcast %15 : vector<8x1xf32> to vector<8x512xf32>
    %17 = arith.mulf %11, %16 : vector<8x512xf32>
    %c0_10 = arith.constant 0 : index
    %c0_11 = arith.constant 0 : index
    %18 = vector.load %arg5[%c0_10, %c0_11] : memref<8x512xf32, #tpu.memory_space<vmem>>, vector<8x512xf32>
    tpu.vector_store %arg5[%c0_10, %c0_11], %17 {strides = array<i32>} : memref<8x512xf32, #tpu.memory_space<vmem>>, vector<8x512xf32>,
    return
  }
  func.func @transform_0(%arg0: i32) -> (i32, i32) {
    %c0_i32 = arith.constant 0 : i32
    %c0_i32_0 = arith.constant 0 : i32
    return %arg0, %c0_i32 : i32, i32
  }
  func.func @transform_1(%arg0: i32) -> (i32, i32) {
    %c0_i32 = arith.constant 0 : i32
    %c0_i32_0 = arith.constant 0 : i32
    %c0_i32_1 = arith.constant 0 : i32
    return %c0_i32, %c0_i32_0 : i32, i32
  }
  func.func @transform_2(%arg0: i32) -> (i32, i32) {
    %c0_i32 = arith.constant 0 : i32
    %c0_i32_0 = arith.constant 0 : i32
    %c0_i32_1 = arith.constant 0 : i32
    return %c0_i32, %c0_i32_0 : i32, i32
  }
  func.func @transform_3(%arg0: i32) -> (i32, i32) {
    %c0_i32 = arith.constant 0 : i32
    %c0_i32_0 = arith.constant 0 : i32
    return %arg0, %c0_i32 : i32, i32
  }
  func.func @transform_4(%arg0: i32) -> (i32, i32) {
    %c0_i32 = arith.constant 0 : i32
    %c0_i32_0 = arith.constant 0 : i32
    return %arg0, %c0_i32 : i32, i32
  }
}

</mosaic_0001>

<bundles_post_ra>
// kernel: clip_reducer.1
= control target key start
LH: loop header
LB: loop body
LE: loop exit
PB: predicated region body
PF: predicated region fallthrough
CT: control target
= control target key end

     0   :  { %s1014_s0 = inlined_call_operand.vmem [shape: f32[8,512], index: 0, kind: input, shape index: {}]   ;;  %s1015_s1 = inlined_call_operand.vmem [shape: f32[512,128], index: 1, kind: input, shape index: {}]   ;;  %s1016_s2 = inlined_call_operand.vmem [shape: f32[128,512], index: 2, kind: input, shape index: {}]   ;;  %s1017_s3 = inlined_call_operand.hbm [shape: f32[8,128], index: 3, kind: output, shape index: {0}]   ;;  %s1018_s4 = inlined_call_operand.vmem [shape: f32[8,512], index: 4, kind: output, shape index: {1}]  }
   0x1   :  { %v52_v0 = vld [vmem:[%s1015_s1 + $0xf8] sm:$0xff]  ;;  %v51_v4 = vld [vmem:[%s1015_s1 + $0xf0] sm:$0xff]  ;;  %v50_v8 = vld [vmem:[%s1015_s1 + $0xe8] sm:$0xff] }
   0x2   :  { %v84_v1 = vld [vmem:[%s1015_s1 + $0x1f8] sm:$0xff]  ;;  %473 = vmatprep.subr.mxu0 %v52_v0  ;;  %v83_v5 = vld [vmem:[%s1015_s1 + $0x1f0] sm:$0xff]  ;;  %v82_v9 = vld [vmem:[%s1015_s1 + $0x1e8] sm:$0xff] }
   0x3   :  { %v36_v2 = vld [vmem:[%s1015_s1 + $0x78] sm:$0xff]  ;;  %508 = vmatprep.subr.mxu1 %v84_v1  ;;  %v35_v6 = vld [vmem:[%s1015_s1 + $0x70] sm:$0xff]  ;;  %v34_v10 = vld [vmem:[%s1015_s1 + $0x68] sm:$0xff] }
   0x4   :  { %v68_v3 = vld [vmem:[%s1015_s1 + $0x178] sm:$0xff]  ;;  %474 = vmatpush3.msra.mxu0 %v36_v2  ;;  %v67_v7 = vld [vmem:[%s1015_s1 + $0x170] sm:$0xff]  ;;  %v66_v11 = vld [vmem:[%s1015_s1 + $0x168] sm:$0xff] }
   0x5   :  { %509 = vmatpush3.msra.mxu1 %v68_v3  ;;  %475 = vmatprep.subr.mxu0 %v51_v4  ;;  %v49_v12 = vld [vmem:[%s1015_s1 + $0xe0] sm:$0xff]  ;;  %v48_v16 = vld [vmem:[%s1015_s1 + $0xd8] sm:$0xff]  ;;  %v47_v20 = vld [vmem:[%s1015_s1 + $0xd0] sm:$0xff] }
   0x6   :  { %510 = vmatprep.subr.mxu1 %v83_v5  ;;  %476 = vmatpush3.msra.mxu0 %v35_v6  ;;  %v81_v13 = vld [vmem:[%s1015_s1 + $0x1e0] sm:$0xff]  ;;  %v80_v17 = vld [vmem:[%s1015_s1 + $0x1d8] sm:$0xff]  ;;  %v79_v21 = vld [vmem:[%s1015_s1 + $0x1d0] sm:$0xff] }
   0x7   :  { %511 = vmatpush3.msra.mxu1 %v67_v7  ;;  %477 = vmatprep.subr.mxu0 %v50_v8  ;;  %v33_v14 = vld [vmem:[%s1015_s1 + $0x60] sm:$0xff]  ;;  %v32_v18 = vld [vmem:[%s1015_s1 + $0x58] sm:$0xff]  ;;  %v31_v22 = vld [vmem:[%s1015_s1 + $0x50] sm:$0xff] }
   0x8   :  { %512 = vmatprep.subr.mxu1 %v82_v9  ;;  %v65_v15 = vld [vmem:[%s1015_s1 + $0x160] sm:$0xff]  ;;  %478 = vmatpush3.msra.mxu0 %v34_v10  ;;  %v64_v19 = vld [vmem:[%s1015_s1 + $0x158] sm:$0xff]  ;;  %v63_v23 = vld [vmem:[%s1015_s1 + $0x150] sm:$0xff] }
   0x9   :  { %513 = vmatpush3.msra.mxu1 %v66_v11  ;;  %479 = vmatprep.subr.mxu0 %v49_v12  ;;  %v46_v24 = vld [vmem:[%s1015_s1 + $0xc8] sm:$0xff]  ;;  %v45_v28 = vld [vmem:[%s1015_s1 + $0xc0] sm:$0xff]  ;;  %v44_v32 = vld [vmem:[%s1015_s1 + $0xb8] sm:$0xff] }
   0xa   :  { %514 = vmatprep.subr.mxu1 %v81_v13  ;;  %480 = vmatpush3.msra.mxu0 %v33_v14  ;;  %v78_v25 = vld [vmem:[%s1015_s1 + $0x1c8] sm:$0xff]  ;;  %v77_v29 = vld [vmem:[%s1015_s1 + $0x1c0] sm:$0xff]  ;;  %v76_v33 = vld [vmem:[%s1015_s1 + $0x1b8] sm:$0xff] }
   0xb   :  { %515 = vmatpush3.msra.mxu1 %v65_v15  ;;  %481 = vmatprep.subr.mxu0 %v48_v16  ;;  %v30_v26 = vld [vmem:[%s1015_s1 + $0x48] sm:$0xff]  ;;  %v29_v30 = vld [vmem:[%s1015_s1 + $0x40] sm:$0xff]  ;;  %v28_v34 = vld [vmem:[%s1015_s1 + $0x38] sm:$0xff] }
   0xc   :  { %516 = vmatprep.subr.mxu1 %v80_v17  ;;  %482 = vmatpush3.msra.mxu0 %v32_v18  ;;  %v62_v27 = vld [vmem:[%s1015_s1 + $0x148] sm:$0xff]  ;;  %v61_v31 = vld [vmem:[%s1015_s1 + $0x140] sm:$0xff]  ;;  %v60_v35 = vld [vmem:[%s1015_s1 + $0x138] sm:$0xff] }
   0xd   :  { %517 = vmatpush3.msra.mxu1 %v64_v19  ;;  %483 = vmatprep.subr.mxu0 %v47_v20  ;;  %v43_v36 = vld [vmem:[%s1015_s1 + $0xb0] sm:$0xff]  ;;  %v42_v40 = vld [vmem:[%s1015_s1 + $0xa8] sm:$0xff]  ;;  %v41_v44 = vld [vmem:[%s1015_s1 + $0xa0] sm:$0xff] }
   0xe   :  { %518 = vmatprep.subr.mxu1 %v79_v21  ;;  %484 = vmatpush3.msra.mxu0 %v31_v22  ;;  %v75_v37 = vld [vmem:[%s1015_s1 + $0x1b0] sm:$0xff]  ;;  %v74_v41 = vld [vmem:[%s1015_s1 + $0x1a8] sm:$0xff]  ;;  %v73_v45 = vld [vmem:[%s1015_s1 + $0x1a0] sm:$0xff] }
   0xf   :  { %519 = vmatpush3.msra.mxu1 %v63_v23  ;;  %485 = vmatprep.subr.mxu0 %v46_v24  ;;  %v27_v38 = vld [vmem:[%s1015_s1 + $0x30] sm:$0xff]  ;;  %v26_v42 = vld [vmem:[%s1015_s1 + $0x28] sm:$0xff]  ;;  %v25_v46 = vld [vmem:[%s1015_s1 + $0x20] sm:$0xff] }
  0x10   :  { %520 = vmatprep.subr.mxu1 %v78_v25  ;;  %486 = vmatpush3.msra.mxu0 %v30_v26  ;;  %v59_v39 = vld [vmem:[%s1015_s1 + $0x130] sm:$0xff]  ;;  %v58_v43 = vld [vmem:[%s1015_s1 + $0x128] sm:$0xff]  ;;  %v57_v47 = vld [vmem:[%s1015_s1 + $0x120] sm:$0xff] }
  0x11   :  { %521 = vmatpush3.msra.mxu1 %v62_v27  ;;  %487 = vmatprep.subr.mxu0 %v45_v28  ;;  %v40_v48 = vld [vmem:[%s1015_s1 + $0x98] sm:$0xff] }
  0x12   :  { %522 = vmatprep.subr.mxu1 %v77_v29  ;;  %488 = vmatpush3.msra.mxu0 %v29_v30  ;;  %v72_v49 = vld [vmem:[%s1015_s1 + $0x198] sm:$0xff] }
  0x13   :  { %523 = vmatpush3.msra.mxu1 %v61_v31  ;;  %489 = vmatprep.subr.mxu0 %v44_v32 }
  0x14   :  { %524 = vmatprep.subr.mxu1 %v76_v33  ;;  %490 = vmatpush3.msra.mxu0 %v28_v34 }
  0x15   :  { %525 = vmatpush3.msra.mxu1 %v60_v35  ;;  %491 = vmatprep.subr.mxu0 %v43_v36 }
  0x16   :  { %526 = vmatprep.subr.mxu1 %v75_v37  ;;  %492 = vmatpush3.msra.mxu0 %v27_v38 }
  0x17   :  { %527 = vmatpush3.msra.mxu1 %v59_v39  ;;  %493 = vmatprep.subr.mxu0 %v42_v40 }
  0x18   :  { %528 = vmatprep.subr.mxu1 %v74_v41  ;;  %494 = vmatpush3.msra.mxu0 %v26_v42 }
  0x19   :  { %529 = vmatpush3.msra.mxu1 %v58_v43 }
  0x1a   :  { %10 = vsyncpa [#allocation3], 0  ;;  %495 = vmatprep.subr.mxu0 %v41_v44  ;;  %530 = vmatprep.subr.mxu1 %v73_v45  ;;  %v24_v50 = vld [vmem:[%s1015_s1 + $0x18] sm:$0xff]  ;;  %v39_v52 = vld [vmem:[%s1015_s1 + $0x90] sm:$0xff] }
  0x1b   :  { %v56_v51 = vld [vmem:[%s1015_s1 + $0x118] sm:$0xff]  ;;  %496 = vmatpush3.msra.mxu0 %v25_v46  ;;  %531 = vmatpush3.msra.mxu1 %v57_v47  ;;  %v71_v53 = vld [vmem:[%s1015_s1 + $0x190] sm:$0xff]  ;;  %v38_v56 = vld [vmem:[%s1015_s1 + $0x88] sm:$0xff] }
  0x1c   :  { %497 = vmatprep.subr.mxu0 %v40_v48  ;;  %532 = vmatprep.subr.mxu1 %v72_v49  ;;  %v23_v54 = vld [vmem:[%s1015_s1 + $0x10] sm:$0xff]  ;;  %v70_v57 = vld [vmem:[%s1015_s1 + $0x188] sm:$0xff]  ;;  %v37_v60 = vld [vmem:[%s1015_s1 + $0x80] sm:$0xff] }
  0x1d   :  { %v55_v55 = vld [vmem:[%s1015_s1 + $0x110] sm:$0xff]  ;;  %498 = vmatpush3.msra.mxu0 %v24_v50  ;;  %533 = vmatpush3.msra.mxu1 %v56_v51  ;;  %v22_v58 = vld [vmem:[%s1015_s1 + $0x8] sm:$0xff]  ;;  %v69_v61 = vld [vmem:[%s1015_s1 + $0x180] sm:$0xff] }
  0x1e   :  { %499 = vmatprep.subr.mxu0 %v39_v52  ;;  %534 = vmatprep.subr.mxu1 %v71_v53  ;;  %v54_v59 = vld [vmem:[%s1015_s1 + $0x108] sm:$0xff]  ;;  %v21_v62 = vld [vmem:[%s1015_s1] sm:$0xff]  ;;  %v20_v1 = vld [vmem:[%s1014_s0 + $0x18] sm:$0xff] }
  0x1f   :  { %500 = vmatpush3.msra.mxu0 %v23_v54  ;;  %535 = vmatpush3.msra.mxu1 %v55_v55  ;;  %v18_v63 = vld [vmem:[%s1014_s0 + $0x8] sm:$0xff]  ;;  %v53_v0 = vld [vmem:[%s1015_s1 + $0x100] sm:$0xff]  ;;  %v19_v3 = vld [vmem:[%s1014_s0 + $0x10] sm:$0xff] }
  0x20   :  { %501 = vmatprep.subr.mxu0 %v38_v56  ;;  %536 = vmatprep.subr.mxu1 %v70_v57  ;;  %v17_v2 = vld [vmem:[%s1014_s0] sm:$0xff]  ;;  %v292_v4 = vld [vmem:[%s1016_s2 + $0x1e8] sm:$0xff]  ;;  %v294_v5 = vld [vmem:[%s1016_s2 + $0x1f8] sm:$0xff] }
  0x21   :  { %502 = vmatpush3.msra.mxu0 %v22_v58  ;;  %537 = vmatpush3.msra.mxu1 %v54_v59  ;;  %v291_v6 = vld [vmem:[%s1016_s2 + $0x1e0] sm:$0xff]  ;;  %v293_v7 = vld [vmem:[%s1016_s2 + $0x1f0] sm:$0xff]  ;;  %v288_v8 = vld [vmem:[%s1016_s2 + $0x1c8] sm:$0xff] }
  0x22   :  { %503 = vmatprep.subr.mxu0 %v37_v60  ;;  %538 = vmatprep.subr.mxu1 %v69_v61  ;;  %v290_v9 = vld [vmem:[%s1016_s2 + $0x1d8] sm:$0xff]  ;;  %v287_v10 = vld [vmem:[%s1016_s2 + $0x1c0] sm:$0xff]  ;;  %v289_v11 = vld [vmem:[%s1016_s2 + $0x1d0] sm:$0xff] }
  0x23   :  { %504 = vmatpush3.msra.mxu0 %v21_v62  ;;  %149 = vmatprep.mubr.f32.mxu0 %v18_v63  ;;  %v284_v12 = vld [vmem:[%s1016_s2 + $0x1a8] sm:$0xff]  ;;  %v286_v13 = vld [vmem:[%s1016_s2 + $0x1b8] sm:$0xff]  ;;  %v283_v14 = vld [vmem:[%s1016_s2 + $0x1a0] sm:$0xff] }
  0x24   :  { %539 = vmatpush3.msra.mxu1 %v53_v0  ;;  %219 = vmatprep.mubr.f32.mxu1 %v20_v1  ;;  %v285_v15 = vld [vmem:[%s1016_s2 + $0x1b0] sm:$0xff]  ;;  %v280_v16 = vld [vmem:[%s1016_s2 + $0x188] sm:$0xff]  ;;  %v282_v17 = vld [vmem:[%s1016_s2 + $0x198] sm:$0xff] }
  0x25   :  { %150 = vmatmul.mubr.f32.vlgmr.msra.gmra.mxu0 %v17_v2  ;;  %220 = vmatmul.mubr.f32.vlgmr.msra.gmra.mxu1 %v19_v3  ;;  %v279_v18 = vld [vmem:[%s1016_s2 + $0x180] sm:$0xff]  ;;  %v281_v19 = vld [vmem:[%s1016_s2 + $0x190] sm:$0xff]  ;;  %v276_v20 = vld [vmem:[%s1016_s2 + $0x168] sm:$0xff] }
  0x26   :  { %295 = vmatprep.subr.mxu0 %v292_v4  ;;  %366 = vmatprep.subr.mxu1 %v294_v5  ;;  %v278_v21 = vld [vmem:[%s1016_s2 + $0x178] sm:$0xff]  ;;  %v275_v22 = vld [vmem:[%s1016_s2 + $0x160] sm:$0xff]  ;;  %v277_v23 = vld [vmem:[%s1016_s2 + $0x170] sm:$0xff] }
  0x27   :  { %296 = vmatpush1.msra.mxu0 %v291_v6  ;;  %367 = vmatpush1.msra.mxu1 %v293_v7  ;;  %v272_v24 = vld [vmem:[%s1016_s2 + $0x148] sm:$0xff]  ;;  %v274_v25 = vld [vmem:[%s1016_s2 + $0x158] sm:$0xff]  ;;  %v271_v26 = vld [vmem:[%s1016_s2 + $0x140] sm:$0xff] }
  0x28   :  { %297 = vmatprep.subr.mxu0 %v288_v8  ;;  %368 = vmatprep.subr.mxu1 %v290_v9  ;;  %v273_v27 = vld [vmem:[%s1016_s2 + $0x150] sm:$0xff]  ;;  %v268_v28 = vld [vmem:[%s1016_s2 + $0x128] sm:$0xff]  ;;  %v270_v29 = vld [vmem:[%s1016_s2 + $0x138] sm:$0xff] }
  0x29   :  { %298 = vmatpush1.msra.mxu0 %v287_v10  ;;  %369 = vmatpush1.msra.mxu1 %v289_v11  ;;  %v267_v30 = vld [vmem:[%s1016_s2 + $0x120] sm:$0xff]  ;;  %v269_v31 = vld [vmem:[%s1016_s2 + $0x130] sm:$0xff]  ;;  %v264_v32 = vld [vmem:[%s1016_s2 + $0x108] sm:$0xff] }
  0x2a   :  { %299 = vmatprep.subr.mxu0 %v284_v12  ;;  %370 = vmatprep.subr.mxu1 %v286_v13  ;;  %v266_v33 = vld [vmem:[%s1016_s2 + $0x118] sm:$0xff]  ;;  %v263_v34 = vld [vmem:[%s1016_s2 + $0x100] sm:$0xff]  ;;  %v265_v35 = vld [vmem:[%s1016_s2 + $0x110] sm:$0xff]  ;;  %v571_v12 = vmov 0.0  }
  0x2b   :  { %300 = vmatpush1.msra.mxu0 %v283_v14  ;;  %371 = vmatpush1.msra.mxu1 %v285_v15  ;;  %v260_v44 = vld [vmem:[%s1016_s2 + $0xe8] sm:$0xff]  ;;  %v262_v45 = vld [vmem:[%s1016_s2 + $0xf8] sm:$0xff]  ;;  %v259_v46 = vld [vmem:[%s1016_s2 + $0xe0] sm:$0xff] }
  0x2c   :  { %301 = vmatprep.subr.mxu0 %v280_v16  ;;  %372 = vmatprep.subr.mxu1 %v282_v17  ;;  %v261_v47 = vld [vmem:[%s1016_s2 + $0xf0] sm:$0xff]  ;;  %v256_v48 = vld [vmem:[%s1016_s2 + $0xc8] sm:$0xff]  ;;  %v258_v49 = vld [vmem:[%s1016_s2 + $0xd8] sm:$0xff] }
  0x2d   :  { %302 = vmatpush1.msra.mxu0 %v279_v18  ;;  %373 = vmatpush1.msra.mxu1 %v281_v19  ;;  %v255_v50 = vld [vmem:[%s1016_s2 + $0xc0] sm:$0xff]  ;;  %v257_v51 = vld [vmem:[%s1016_s2 + $0xd0] sm:$0xff]  ;;  %v252_v52 = vld [vmem:[%s1016_s2 + $0xa8] sm:$0xff] }
  0x2e   :  { %303 = vmatprep.subr.mxu0 %v276_v20  ;;  %374 = vmatprep.subr.mxu1 %v278_v21  ;;  %v254_v53 = vld [vmem:[%s1016_s2 + $0xb8] sm:$0xff]  ;;  %v251_v54 = vld [vmem:[%s1016_s2 + $0xa0] sm:$0xff]  ;;  %v253_v55 = vld [vmem:[%s1016_s2 + $0xb0] sm:$0xff] }
  0x2f   :  { %304 = vmatpush1.msra.mxu0 %v275_v22  ;;  %375 = vmatpush1.msra.mxu1 %v277_v23  ;;  %v248_v56 = vld [vmem:[%s1016_s2 + $0x88] sm:$0xff]  ;;  %v250_v57 = vld [vmem:[%s1016_s2 + $0x98] sm:$0xff]  ;;  %v247_v58 = vld [vmem:[%s1016_s2 + $0x80] sm:$0xff] }
  0x30   :  { %305 = vmatprep.subr.mxu0 %v272_v24  ;;  %376 = vmatprep.subr.mxu1 %v274_v25  ;;  %v249_v59 = vld [vmem:[%s1016_s2 + $0x90] sm:$0xff]  ;;  %v244_v60 = vld [vmem:[%s1016_s2 + $0x68] sm:$0xff]  ;;  %v246_v61 = vld [vmem:[%s1016_s2 + $0x78] sm:$0xff] }
  0x31   :  { %306 = vmatpush1.msra.mxu0 %v271_v26  ;;  %377 = vmatpush1.msra.mxu1 %v273_v27  ;;  %v243_v62 = vld [vmem:[%s1016_s2 + $0x60] sm:$0xff]  ;;  %v245_v63 = vld [vmem:[%s1016_s2 + $0x70] sm:$0xff]  ;;  %v240_v0 = vld [vmem:[%s1016_s2 + $0x48] sm:$0xff] }
  0x32   :  { %307 = vmatprep.subr.mxu0 %v268_v28  ;;  %378 = vmatprep.subr.mxu1 %v270_v29  ;;  %v242_v1 = vld [vmem:[%s1016_s2 + $0x58] sm:$0xff]  ;;  %v239_v2 = vld [vmem:[%s1016_s2 + $0x40] sm:$0xff]  ;;  %v241_v3 = vld [vmem:[%s1016_s2 + $0x50] sm:$0xff] }
  0x33   :  { %308 = vmatpush1.msra.mxu0 %v267_v30  ;;  %379 = vmatpush1.msra.mxu1 %v269_v31  ;;  %v236_v4 = vld [vmem:[%s1016_s2 + $0x28] sm:$0xff]  ;;  %v238_v5 = vld [vmem:[%s1016_s2 + $0x38] sm:$0xff]  ;;  %v235_v6 = vld [vmem:[%s1016_s2 + $0x20] sm:$0xff] }
  0x34   :  { %309 = vmatprep.subr.mxu0 %v264_v32  ;;  %380 = vmatprep.subr.mxu1 %v266_v33  ;;  %v237_v7 = vld [vmem:[%s1016_s2 + $0x30] sm:$0xff]  ;;  %v232_v8 = vld [vmem:[%s1016_s2 + $0x8] sm:$0xff]  ;;  %v234_v9 = vld [vmem:[%s1016_s2 + $0x18] sm:$0xff] }
  0x35   :  { %310 = vmatpush1.msra.mxu0 %v263_v34  ;;  %381 = vmatpush1.msra.mxu1 %v265_v35  ;;  %v231_v10 = vld [vmem:[%s1016_s2] sm:$0xff]  ;;  %v233_v11 = vld [vmem:[%s1016_s2 + $0x10] sm:$0xff]  ;;  %s572_s2 = smov [#allocation2]  }
  0x36   :  { %311 = vmatprep.subr.mxu0 %v260_v44  ;;  %382 = vmatprep.subr.mxu1 %v262_v45  ;;  %s461_s9 = sshll.u32 %s572_s2, 4  ;;  %s462_s9 = int_to_ptr.vmem [resolvable:$true] %s461_s9 }
  0x37   :  { %312 = vmatpush1.msra.mxu0 %v259_v46  ;;  %383 = vmatpush1.msra.mxu1 %v261_v47  ;;  %s549_s10 = scalar_lea.vmem %s462_s9, 128  ;;  %p554_p1 = scmp.lt.s32.totalorder %s462_s9, %s462_s9 }
  0x38   :  { %313 = vmatprep.subr.mxu0 %v256_v48  ;;  %384 = vmatprep.subr.mxu1 %v258_v49  ;;  %p550_p0 = scmp.ne.s32.totalorder %s462_s9, %s549_s10  ;;  %p555_p2 = scmp.lt.s32.totalorder %s549_s10, %s549_s10 }
  0x39   :  { %314 = vmatpush1.msra.mxu0 %v255_v50  ;;  %385 = vmatpush1.msra.mxu1 %v257_v51 }
  0x3a   :  { %315 = vmatprep.subr.mxu0 %v252_v52  ;;  %386 = vmatprep.subr.mxu1 %v254_v53  ;;  %p556_p3 = por %p555_p2, %p554_p1 }
  0x3b   :  { %316 = vmatpush1.msra.mxu0 %v251_v54  ;;  %387 = vmatpush1.msra.mxu1 %v253_v55 }
  0x3c   :  { %317 = vmatprep.subr.mxu0 %v248_v56  ;;  %388 = vmatprep.subr.mxu1 %v250_v57  ;;  %p557_p4 = pnand %p556_p3, %p550_p0 }
  0x3d   :  { %318 = vmatpush1.msra.mxu0 %v247_v58  ;;  %389 = vmatpush1.msra.mxu1 %v249_v59 }
  0x3e   :  { %319 = vmatprep.subr.mxu0 %v244_v60  ;;  %390 = vmatprep.subr.mxu1 %v246_v61 }
  0x3f   :  { %320 = vmatpush1.msra.mxu0 %v243_v62  ;;  %391 = vmatpush1.msra.mxu1 %v245_v63 }
  0x40   :  { %321 = vmatprep.subr.mxu0 %v240_v0  ;;  %392 = vmatprep.subr.mxu1 %v242_v1 }
  0x41   :  { %322 = vmatpush1.msra.mxu0 %v239_v2  ;;  %393 = vmatpush1.msra.mxu1 %v241_v3 }
  0x42   :  { %323 = vmatprep.subr.mxu0 %v236_v4  ;;  %394 = vmatprep.subr.mxu1 %v238_v5 }
  0x43   :  { %324 = vmatpush1.msra.mxu0 %v235_v6  ;;  %395 = vmatpush1.msra.mxu1 %v237_v7 }
  0x44   :  { %325 = vmatprep.subr.mxu0 %v232_v8  ;;  %396 = vmatprep.subr.mxu1 %v234_v9 }
  0x45   :  { %326 = vmatpush1.msra.mxu0 %v231_v10  ;;  %359 = vmatprep.mubr.f32.mxu0 %v571_v12 }
  0x46   :  { %397 = vmatpush1.msra.mxu1 %v233_v11  ;;  %430 = vmatprep.mubr.f32.mxu1 %v571_v12 }
  0xe5   :  { %v505_v36 = vpop.f32.mrf.mxu0  ;;  %v540_v37 = vpop.f32.mrf.mxu1 }
  0xe7   :  { %v506_v38 = vpop.f32.mrf.mxu0  ;;  %v541_v39 = vpop.f32.mrf.mxu1 }
  0xe8   :  { %v507_v40 = vadd.f32 %v506_v38, %v505_v36  ;;  %v542_v41 = vadd.f32 %v541_v39, %v540_v37 }
  0xea   :  { %v898_v42 = vadd.f32 %v542_v41, %v507_v40 }
  0xec   :  { %v225_v43 = vmul.f32 %v898_v42, %v898_v42 }
  0xee   :  { %226 = vadd.xlane.f32.xlu0 %v225_v43 }
 0x177   :  { %v227_v13 = vpop.xlane.xlu0 %226 }
 0x178   :  { %545 = vrsqrt.f32 %v227_v13 }
 0x185   :  { %v546_v14 = vpop.eup %545 }
 0x186   :  { %v229_v15 = vmul.f32 %v546_v14, %v898_v42 }
 0x188   :  { %360 = vmatmul.mubr.f32.vlgmr.msra.gmra.mxu0 %v229_v15  ;;  %230 = vst [vmem:[#allocation2] sm:$0xff] %v229_v15  ;;  %431 = vmatmul.mubr.f32.vlgmr.msra.gmra.mxu1 %v229_v15 }
 0x248   :  { %v361_v16 = vpop.f32.mrf.mxu0  ;;  %v432_v17 = vpop.f32.mrf.mxu1 }
 0x249   :  { %v437_v19 = vmul.f32 %v361_v16, %v361_v16  ;;  %v439_v22 = vmul.f32 %v432_v17, %v432_v17 }
 0x24a   :  { %v363_v18 = vpop.f32.mrf.mxu0  ;;  %v434_v21 = vpop.f32.mrf.mxu1 }
 0x24b   :  { %v438_v20 = vmul.f32 %v363_v18, %v363_v18  ;;  %v440_v24 = vmul.f32 %v434_v21, %v434_v21 }
 0x24d   :  { %v441_v23 = vadd.f32 %v438_v20, %v437_v19 }
 0x24f   :  { %v442_v25 = vadd.f32 %v441_v23, %v439_v22 }
 0x251   :  { %v443_v26 = vadd.f32 %v442_v25, %v440_v24 }
 0x253   :  { %444 = vadd.xlane.f32.xlu0 %v443_v26 }
 0x254   :  { %560 = shalt.err (!%p557_p4)
}
 0x255   :  { %464 = dma.vmem_to_hbm [thread:$0]  %s462_s9, 128, %s1017_s3, [#allocation3]  }
 0x2dc   :  { %v445_v27 = vpop.xlane.xlu0 %444 }
 0x2dd   :  { %547 = vrsqrt.f32 %v445_v27 }
 0x2ea   :  { %v548_v28 = vpop.eup %547 }
 0x2eb   :  { %v447_v29 = vmul.f32 %v548_v28, %v361_v16  ;;  %v448_v30 = vmul.f32 %v548_v28, %v363_v18  ;;  %v449_v31 = vmul.f32 %v548_v28, %v432_v17  ;;  %v450_v32 = vmul.f32 %v548_v28, %v434_v21 }
 0x2ed   :  { %451 = vst [vmem:[%s1018_s4] sm:$0xff] %v447_v29  ;;  %452 = vst [vmem:[%s1018_s4 + $0x8] sm:$0xff] %v448_v30 }
 0x2ee   :  { %453 = vst [vmem:[%s1018_s4 + $0x10] sm:$0xff] %v449_v31  ;;  %454 = vst [vmem:[%s1018_s4 + $0x18] sm:$0xff] %v450_v32 }
 0x2ef   :  { %569 = dma.done.wait [#allocation3], 128  }
 0x2f0   :  { %570 = vsyncadd [#allocation3], 4294967168 }
 0x2f1   :  { %472 = vsyncpa [#allocation3], 1 }

</bundles_post_ra>
